<compile_context>
chip_gen: v7x
topology: tpu7x:2x2x1
jax: 0.10.0
libtpu: 0.0.40
codegen_flags: <defaults>
</compile_context>

<pallas_src>
import functools

import jax
import jax.numpy as jnp
from jax.experimental import pallas as pl
from jax.experimental.pallas import tpu as pltpu

_LANE = 128


def _focal_loss_kernel(x_ref, y_ref, alpha_ref, out_ref, acc_ref,
                       *, gamma, ignore_index, has_alpha):
    t = pl.program_id(2)

    @pl.when(t == 0)
    def _():
        acc_ref[...] = jnp.zeros_like(acc_ref)

    x = x_ref[...].astype(jnp.float32)            # (bt, C, T) logits, lane-dense
    y = y_ref[...].astype(jnp.int32)              # (bt, 1, T) labels (narrow in HBM)

    # log-softmax pieces over the class (sublane) axis.  log_p is never
    # materialized: only lse plus the one-hot-gathered z / exp(z) are needed.
    m = jnp.max(x, axis=1, keepdims=True)         # (bt, 1, T)
    z = x - m
    p = jnp.exp(z)                                # (bt, C, T)
    sum_p = jnp.sum(p, axis=1, keepdims=True)     # (bt, 1, T)
    lse = jnp.log(sum_p)

    cls = jax.lax.broadcasted_iota(jnp.int32, x.shape, 1)
    onehot = cls == y                             # (bt, C, T) bool
    z_y = jnp.sum(jnp.where(onehot, z, 0.0), axis=1, keepdims=True)   # (bt, 1, T)
    p_y = jnp.sum(jnp.where(onehot, p, 0.0), axis=1, keepdims=True)   # (bt, 1, T)

    log_pt = z_y - lse                            # (bt, 1, T)
    # Exact reciprocal keeps the numerics tight; approx=True trades ~1e-4 rel-err
    # for the fast EUP path if more slack is ever needed.
    pt = p_y * pl.reciprocal(sum_p, approx=False)

    valid = y != ignore_index                     # (bt, 1, T) bool
    if has_alpha:
        alpha = alpha_ref[...].astype(jnp.float32)        # (C, 1) class weights
        alpha_y = jnp.sum(jnp.where(onehot, alpha, 0.0), axis=1, keepdims=True)
        nll = -alpha_y * log_pt
    else:
        nll = -log_pt
    ce = jnp.where(valid, nll, 0.0)               # NLLLoss(reduction='none')

    one_minus_pt = 1.0 - pt
    if gamma == 0.0:
        loss = ce
    elif float(gamma).is_integer() and 0 < gamma <= 8:
        # Small-integer gamma (the common case) as multiplies, off the EUP slot.
        focal = one_minus_pt
        for _ in range(int(gamma) - 1):
            focal = focal * one_minus_pt
        loss = focal * ce
    else:
        loss = jnp.maximum(one_minus_pt, 0.0) ** gamma * ce

    # Vector accumulate every step; cross-lane reduce only in the epilogue.
    acc_ref[...] += jnp.sum(loss, axis=0)         # (1, T)

    @pl.when(t == pl.num_programs(2) - 1)
    def _():
        out_ref[...] = jnp.sum(acc_ref[...], axis=-1, keepdims=True).reshape(1, 1, 1)


def _round_up(x, m):
    return (x + m - 1) // m * m


def _vmem_capacity_bytes():
    try:
        return int(pltpu.get_tpu_info().vmem_capacity_bytes)
    except Exception:
        return 64 * 1024 * 1024   # conservative fallback: v7x per-TensorCore VMEM


def _label_dtype_for(num_classes, ignore_index):
    ii = int(ignore_index)
    if num_classes <= 2 ** 15 - 1 and -2 ** 15 <= ii < 2 ** 15:
        return jnp.int16          # halves the label HBM stream vs int32
    return jnp.int32


def _plan(B, C, HW, x_itemsize, y_itemsize, tile_hw):
    """Pick (tile, padded HW, batch block, HW splits, tiles/split, vmem limit)."""
    capacity = _vmem_capacity_bytes()
    budget = capacity // 8        # working-set budget per grid step
    # VMEM bytes per lane of a tile: double-buffered logits + label blocks plus
    # ~4 (C,T)-sized f32 temporaries (the sublane reductions break elementwise
    # fusion) and a handful of (1,T) f32 vectors.
    per_lane = 2 * C * x_itemsize + 2 * y_itemsize + 4 * C * 4 + 8 * 4

    if tile_hw is None:
        cands = [_LANE << i for i in range(10)]                # 128 .. 65536
        fitting = [c for c in cands if c * per_lane <= budget] or [_LANE]
        tile = None
        if HW % _LANE == 0:
            for c in reversed(fitting):                        # largest divisor first
                if HW % c == 0:
                    tile = c
                    break
        if tile is None:                                       # needs padding anyway
            tile = min(max(fitting), _round_up(HW, _LANE))
    else:
        tile = int(tile_hw)
        assert tile % _LANE == 0, "tile_hw must be a multiple of 128"

    hw_padded = _round_up(HW, tile)
    total_tiles = hw_padded // tile

    # Small-image / large-batch: block several batch rows per step so per-step
    # DMA stays large enough to amortize the ~0.35us grid overhead.
    bt = 1
    if total_tiles == 1:
        cap = max(1, min(B, budget // max(1, per_lane * tile)))
        for cand in range(cap, 0, -1):
            if B % cand == 0:
                bt = cand
                break
    n_bblocks = B // bt

    # HW split so both v7x TensorCores have work when the batch axis is 1.
    n_splits = 2 if (n_bblocks == 1 and total_tiles >= 2 and total_tiles % 2 == 0) else 1
    tiles_per_split = total_tiles // n_splits

    # Raise the scoped-VMEM limit (v5e default 16 MiB, v6e 32 MiB) but stay well
    # inside physical capacity (v7x only has 64 MiB per TensorCore).
    vmem_limit = int(capacity * 3 // 4)
    return tile, hw_padded, bt, n_bblocks, n_splits, tiles_per_split, vmem_limit


def focal_loss(x, y, *, alpha=None, gamma=0.0, reduction='mean',
               ignore_index=-100, tile_hw=None):
    """Focal loss forward.

    x: (B, C) or (B, C, d1..dK) float logits; y: (B,) or (B, d1..dK) int labels.
    """
    # TODO(synk): reduction='none' would need an (N,)-shaped per-element output;
    # only 'mean'/'sum' are implemented here.
    assert reduction in ('mean', 'sum')
    B, C = x.shape[0], x.shape[1]
    HW = 1
    for d in x.shape[2:]:
        HW *= d
    N = B * HW

    x3d = x.reshape(B, C, HW)                       # NCHW is already (B, C, HW)-contiguous
    label_dtype = _label_dtype_for(C, ignore_index)
    # (Cheaper still if the caller already supplies labels in `label_dtype`;
    # the astype is then a no-op.)
    y3d = y.reshape(B, 1, HW).astype(label_dtype)

    tile, hw_padded, bt, n_bblocks, n_splits, tiles_per_split, vmem_limit = _plan(
        B, C, HW, jnp.dtype(x.dtype).itemsize, jnp.dtype(label_dtype).itemsize, tile_hw)

    if hw_padded != HW:
        # Pad HW to a lane-dense multiple of the tile; padded labels are
        # ignore_index so they contribute exactly zero, and 'mean' still
        # divides by the unpadded N.
        x3d = jnp.pad(x3d, ((0, 0), (0, 0), (0, hw_padded - HW)))
        y3d = jnp.pad(y3d, ((0, 0), (0, 0), (0, hw_padded - HW)),
                      constant_values=ignore_index)

    has_alpha = alpha is not None
    if has_alpha:
        alpha_arr = jnp.asarray(alpha, dtype=jnp.float32).reshape(C, 1)
    else:
        alpha_arr = jnp.ones((C, 1), dtype=jnp.float32)   # unused by the kernel

    kernel = functools.partial(
        _focal_loss_kernel, gamma=float(gamma),
        ignore_index=int(ignore_index), has_alpha=has_alpha)

    partials = pl.pallas_call(
        kernel,
        out_shape=jax.ShapeDtypeStruct((n_bblocks * n_splits, 1, 1), jnp.float32),
        grid_spec=pltpu.PrefetchScalarGridSpec(
            num_scalar_prefetch=0,
            grid=(n_bblocks, n_splits, tiles_per_split),
            in_specs=[
                pl.BlockSpec((bt, C, tile),
                             lambda b, s, t: (b, 0, s * tiles_per_split + t)),
                pl.BlockSpec((bt, 1, tile),
                             lambda b, s, t: (b, 0, s * tiles_per_split + t)),
                pl.BlockSpec((C, 1), lambda b, s, t: (0, 0)),   # class weights (resident)
            ],
            out_specs=pl.BlockSpec((1, 1, 1),
                                   lambda b, s, t: (b * n_splits + s, 0, 0)),
            scratch_shapes=[pltpu.VMEM((1, tile), jnp.float32)],  # vector accumulator
        ),
        compiler_params=pltpu.CompilerParams(
            dimension_semantics=("parallel", "parallel", "arbitrary"),
            vmem_limit_bytes=vmem_limit),
    )(x3d, y3d, alpha_arr)

    total = jnp.sum(partials)
    if reduction == 'mean':
        total = total / jnp.float32(N)
    return total.astype(x.dtype)


def _focal_loss_ref(x, y, alpha, gamma, reduction, ignore_index=-100):
    """Pure-JAX reference mirroring the torch module."""
    C = x.shape[1]
    if x.ndim > 2:
        perm = (0,) + tuple(range(2, x.ndim)) + (1,)
        xf = jnp.transpose(x, perm).reshape(-1, C)
        yf = y.reshape(-1)
    else:
        xf, yf = x, y
    log_p = jax.nn.log_softmax(xf.astype(jnp.float32), axis=-1)
    a = jnp.ones((C,), jnp.float32) if alpha is None else jnp.asarray(alpha, jnp.float32)
    y_safe = jnp.where(yf == ignore_index, 0, yf)
    log_pt = jnp.take_along_axis(log_p, y_safe[:, None], axis=1)[:, 0]
    valid = (yf != ignore_index).astype(jnp.float32)
    ce = -a[y_safe] * log_pt * valid
    pt = jnp.exp(log_pt)
    loss = ((1.0 - pt) ** gamma) * ce
    return loss.mean() if reduction == 'mean' else loss.sum()


if __name__ == "__main__":
    key = jax.random.PRNGKey(0)
    k1, k2, k3, k4, k5, k6 = jax.random.split(key, 6)

    # Case 1: canonical small shape; alpha weights, gamma=2, ignore_index,
    # multi-batch blocking path (one tile covers the whole image).
    B, C, H, W = 2, 4, 16, 16
    x1 = jax.random.normal(k1, (B, C, H, W), dtype=jnp.float32)
    y1 = jax.random.randint(k2, (B, H, W), 0, C, dtype=jnp.int32)
    y1 = y1.at[0, 0, 0].set(-100)
    alpha1 = jnp.array([0.25, 0.5, 1.0, 2.0], dtype=jnp.float32)

    got = focal_loss(x1, y1, alpha=alpha1, gamma=2.0, reduction='mean')
    jax.block_until_ready(got)
    ref = _focal_loss_ref(x1, y1, alpha1, 2.0, 'mean')
    assert jnp.allclose(got, ref, rtol=1e-5, atol=1e-6), (got, ref)

    got = focal_loss(x1, y1, alpha=alpha1, gamma=2.0, reduction='sum')
    jax.block_until_ready(got)
    ref = _focal_loss_ref(x1, y1, alpha1, 2.0, 'sum')
    assert jnp.allclose(got, ref, rtol=1e-5, atol=1e-4), (got, ref)

    # Case 2: non-128-aligned spatial size (padding path), no alpha,
    # non-integer gamma, odd channel count.
    B, C, H, W = 1, 5, 10, 12
    x2 = jax.random.normal(k3, (B, C, H, W), dtype=jnp.float32)
    y2 = jax.random.randint(k4, (B, H, W), 0, C, dtype=jnp.int32)
    y2 = y2.at[0, 3, 5].set(-100)
    got = focal_loss(x2, y2, alpha=None, gamma=1.5, reduction='mean')
    jax.block_until_ready(got)
    ref = _focal_loss_ref(x2, y2, None, 1.5, 'mean')
    assert jnp.allclose(got, ref, rtol=1e-5, atol=1e-6), (got, ref)

    # Case 3: forced small tile -> multi-tile grid with the HW split
    # (exercises the dual-TensorCore split and the accumulator epilogue).
    B, C, H, W = 1, 4, 16, 64
    x3 = jax.random.normal(k5, (B, C, H, W), dtype=jnp.float32)
    y3 = jax.random.randint(k6, (B, H, W), 0, C, dtype=jnp.int32)
    alpha3 = jnp.array([1.0, 2.0, 0.5, 0.25], dtype=jnp.float32)
    got = focal_loss(x3, y3, alpha=alpha3, gamma=2.0, reduction='sum', tile_hw=128)
    jax.block_until_ready(got)
    ref = _focal_loss_ref(x3, y3, alpha3, 2.0, 'sum')
    assert jnp.allclose(got, ref, rtol=1e-5, atol=1e-3), (got, ref)

    print("KERNEL_OK")
</pallas_src>

<mosaic_0001>
module attributes {stable_mosaic.version = 11 : i64} {
  func.func @_focal_loss_kernel(%arg0: i32, %arg1: i32, %arg2: i32, %arg3: memref<2x4x256xf32, #tpu.memory_space<vmem>>, %arg4: memref<2x1x256xi16, #tpu.memory_space<vmem>>, %arg5: memref<4x1xf32, #tpu.memory_space<vmem>>, %arg6: memref<1x1x1xf32, #tpu.memory_space<vmem>>, %arg7: memref<1x256xf32, #tpu.memory_space<vmem>>) attributes {dimension_semantics = [#tpu.dimension_semantics<parallel>, #tpu.dimension_semantics<parallel>, #tpu.dimension_semantics<arbitrary>], iteration_bounds = array<i64: 1, 1, 1>, scalar_prefetch = 0 : i64, scratch_operands = 1 : i64, tpu.core_type = #tpu.core_type<tc>, window_params = [{transform_indices = @transform_0, window_bounds = array<i64: 2, 4, 256>}, {transform_indices = @transform_1, window_bounds = array<i64: 2, 1, 256>}, {pipeline_mode = #tpu.pipeline_mode<synchronous>, transform_indices = @transform_2, window_bounds = array<i64: 4, 1>}, {transform_indices = @transform_3, window_bounds = array<i64: 1, 1, 1>}]} {
    %c0_i32 = arith.constant 0 : i32
    %0 = arith.cmpi eq, %arg2, %c0_i32 : i32
    %1 = arith.extui %0 : i1 to i32
    %c0_i32_0 = arith.constant 0 : i32
    %2 = arith.cmpi ne, %1, %c0_i32_0 : i32
    scf.if %2 {
      %cst_25 = arith.constant 0.000000e+00 : f32
      %53 = vector.broadcast %cst_25 : f32 to vector<1x256xf32>
      %c0_26 = arith.constant 0 : index
      %c0_27 = arith.constant 0 : index
      %54 = vector.load %arg7[%c0_26, %c0_27] : memref<1x256xf32, #tpu.memory_space<vmem>>, vector<1x256xf32>
      tpu.vector_store %arg7[%c0_26, %c0_27], %53 {strides = array<i32>} : memref<1x256xf32, #tpu.memory_space<vmem>>, vector<1x256xf32>,
    } else {
    }
    %c0 = arith.constant 0 : index
    %c0_1 = arith.constant 0 : index
    %c0_2 = arith.constant 0 : index
    %3 = vector.load %arg3[%c0, %c0_1, %c0_2] : memref<2x4x256xf32, #tpu.memory_space<vmem>>, vector<2x4x256xf32>
    %c0_3 = arith.constant 0 : index
    %c0_4 = arith.constant 0 : index
    %c0_5 = arith.constant 0 : index
    %4 = vector.load %arg4[%c0_3, %c0_4, %c0_5] : memref<2x1x256xi16, #tpu.memory_space<vmem>>, vector<2x1x256xi16>
    %5 = arith.extsi %4 : vector<2x1x256xi16> to vector<2x1x256xi32>
    %cst = arith.constant dense<0xFF800000> : vector<2x256xf32>
    %6 = vector.multi_reduction <maximumf>, %3, %cst [1] : vector<2x4x256xf32> to vector<2x256xf32>
    %7 = vector.shape_cast %6 : vector<2x256xf32> to vector<2x1x256xf32>
    %8 = vector.broadcast %7 : vector<2x1x256xf32> to vector<2x4x256xf32>
    %9 = arith.subf %3, %8 : vector<2x4x256xf32>
    %10 = math.exp %9 : vector<2x4x256xf32>
    %cst_6 = arith.constant dense<0.000000e+00> : vector<2x256xf32>
    %11 = vector.multi_reduction <add>, %10, %cst_6 [1] : vector<2x4x256xf32> to vector<2x256xf32>
    %12 = vector.shape_cast %11 : vector<2x256xf32> to vector<2x1x256xf32>
    %13 = math.log %12 : vector<2x1x256xf32>
    %14 = tpu.iota {dimensions = array<i32: 1>} : vector<2x4x256xi32>
    %15 = vector.broadcast %5 : vector<2x1x256xi32> to vector<2x4x256xi32>
    %16 = arith.cmpi eq, %14, %15 : vector<2x4x256xi32>
    %cst_7 = arith.constant 0.000000e+00 : f32
    %17 = vector.broadcast %cst_7 : f32 to vector<2x4x256xf32>
    %18 = arith.select %16, %9, %17 : vector<2x4x256xi1>, vector<2x4x256xf32>
    %cst_8 = arith.constant dense<0.000000e+00> : vector<2x256xf32>
    %19 = vector.multi_reduction <add>, %18, %cst_8 [1] : vector<2x4x256xf32> to vector<2x256xf32>
    %20 = vector.shape_cast %19 : vector<2x256xf32> to vector<2x1x256xf32>
    %cst_9 = arith.constant 0.000000e+00 : f32
    %21 = vector.broadcast %cst_9 : f32 to vector<2x4x256xf32>
    %22 = arith.select %16, %10, %21 : vector<2x4x256xi1>, vector<2x4x256xf32>
    %cst_10 = arith.constant dense<0.000000e+00> : vector<2x256xf32>
    %23 = vector.multi_reduction <add>, %22, %cst_10 [1] : vector<2x4x256xf32> to vector<2x256xf32>
    %24 = vector.shape_cast %23 : vector<2x256xf32> to vector<2x1x256xf32>
    %25 = arith.subf %20, %13 : vector<2x1x256xf32>
    %26 = tpu.reciprocal %12 : vector<2x1x256xf32> -> vector<2x1x256xf32>
    %27 = arith.mulf %24, %26 : vector<2x1x256xf32>
    %c-100_i32 = arith.constant -100 : i32
    %28 = vector.broadcast %c-100_i32 : i32 to vector<2x1x256xi32>
    %29 = arith.cmpi ne, %5, %28 : vector<2x1x256xi32>
    %c0_11 = arith.constant 0 : index
    %c0_12 = arith.constant 0 : index
    %30 = vector.load %arg5[%c0_11, %c0_12] : memref<4x1xf32, #tpu.memory_space<vmem>>, vector<4x1xf32>
    %cst_13 = arith.constant 0.000000e+00 : f32
    %31 = vector.shape_cast %30 : vector<4x1xf32> to vector<1x4x1xf32>
    %32 = vector.broadcast %31 : vector<1x4x1xf32> to vector<2x4x256xf32>
    %33 = vector.broadcast %cst_13 : f32 to vector<2x4x256xf32>
    %34 = arith.select %16, %32, %33 : vector<2x4x256xi1>, vector<2x4x256xf32>
    %cst_14 = arith.constant dense<0.000000e+00> : vector<2x256xf32>
    %35 = vector.multi_reduction <add>, %34, %cst_14 [1] : vector<2x4x256xf32> to vector<2x256xf32>
    %36 = vector.shape_cast %35 : vector<2x256xf32> to vector<2x1x256xf32>
    %cst_15 = arith.constant 0.000000e+00 : f32
    %37 = vector.broadcast %cst_15 : f32 to vector<2x1x256xf32>
    %38 = arith.subf %37, %36 : vector<2x1x256xf32>
    %39 = arith.mulf %38, %25 : vector<2x1x256xf32>
    %cst_16 = arith.constant 0.000000e+00 : f32
    %40 = vector.broadcast %cst_16 : f32 to vector<2x1x256xf32>
    %41 = arith.select %29, %39, %40 : vector<2x1x256xi1>, vector<2x1x256xf32>
    %cst_17 = arith.constant 1.000000e+00 : f32
    %42 = vector.broadcast %cst_17 : f32 to vector<2x1x256xf32>
    %43 = arith.subf %42, %27 : vector<2x1x256xf32>
    %44 = arith.mulf %43, %43 : vector<2x1x256xf32>
    %45 = arith.mulf %44, %41 : vector<2x1x256xf32>
    %c0_18 = arith.constant 0 : index
    %c0_19 = arith.constant 0 : index
    %46 = vector.load %arg7[%c0_18, %c0_19] : memref<1x256xf32, #tpu.memory_space<vmem>>, vector<1x256xf32>
    %cst_20 = arith.constant dense<0.000000e+00> : vector<1x256xf32>
    %47 = vector.multi_reduction <add>, %45, %cst_20 [0] : vector<2x1x256xf32> to vector<1x256xf32>
    %48 = arith.addf %46, %47 : vector<1x256xf32>
    %c0_21 = arith.constant 0 : index
    %c0_22 = arith.constant 0 : index
    %49 = vector.load %arg7[%c0_21, %c0_22] : memref<1x256xf32, #tpu.memory_space<vmem>>, vector<1x256xf32>
    tpu.vector_store %arg7[%c0_21, %c0_22], %48 {strides = array<i32>} : memref<1x256xf32, #tpu.memory_space<vmem>>, vector<1x256xf32>,
    %c0_i32_23 = arith.constant 0 : i32
    %50 = arith.cmpi eq, %arg2, %c0_i32_23 : i32
    %51 = arith.extui %50 : i1 to i32
    %c0_i32_24 = arith.constant 0 : i32
    %52 = arith.cmpi ne, %51, %c0_i32_24 : i32
    scf.if %52 {
      %c0_25 = arith.constant 0 : index
      %c0_26 = arith.constant 0 : index
      %53 = vector.load %arg7[%c0_25, %c0_26] : memref<1x256xf32, #tpu.memory_space<vmem>>, vector<1x256xf32>
      %cst_27 = arith.constant dense<0.000000e+00> : vector<1xf32>
      %54 = vector.multi_reduction <add>, %53, %cst_27 [1] : vector<1x256xf32> to vector<1xf32>
      %55 = vector.shape_cast %54 : vector<1xf32> to vector<1x1xf32>
      %56 = vector.shape_cast %55 : vector<1x1xf32> to vector<1x1x1xf32>
      %c0_28 = arith.constant 0 : index
      %c0_29 = arith.constant 0 : index
      %c0_30 = arith.constant 0 : index
      %57 = vector.load %arg6[%c0_28, %c0_29, %c0_30] : memref<1x1x1xf32, #tpu.memory_space<vmem>>, vector<1x1x1xf32>
      tpu.vector_store %arg6[%c0_28, %c0_29, %c0_30], %56 {strides = array<i32>} : memref<1x1x1xf32, #tpu.memory_space<vmem>>, vector<1x1x1xf32>,
    } else {
    }
    return
  }
  func.func @transform_0(%arg0: i32, %arg1: i32, %arg2: i32) -> (i32, i32, i32) {
    %c1_i32 = arith.constant 1 : i32
    %0 = arith.muli %arg1, %c1_i32 : i32
    %1 = arith.addi %0, %arg2 : i32
    %c0_i32 = arith.constant 0 : i32
    %c0_i32_0 = arith.constant 0 : i32
    return %arg0, %c0_i32, %1 : i32, i32, i32
  }
  func.func @transform_1(%arg0: i32, %arg1: i32, %arg2: i32) -> (i32, i32, i32) {
    %c1_i32 = arith.constant 1 : i32
    %0 = arith.muli %arg1, %c1_i32 : i32
    %1 = arith.addi %0, %arg2 : i32
    %c0_i32 = arith.constant 0 : i32
    %c0_i32_0 = arith.constant 0 : i32
    return %arg0, %c0_i32, %1 : i32, i32, i32
  }
  func.func @transform_2(%arg0: i32, %arg1: i32, %arg2: i32) -> (i32, i32) {
    %c0_i32 = arith.constant 0 : i32
    %c0_i32_0 = arith.constant 0 : i32
    %c0_i32_1 = arith.constant 0 : i32
    return %c0_i32, %c0_i32_0 : i32, i32
  }
  func.func @transform_3(%arg0: i32, %arg1: i32, %arg2: i32) -> (i32, i32, i32) {
    %c1_i32 = arith.constant 1 : i32
    %0 = arith.muli %arg0, %c1_i32 : i32
    %1 = arith.addi %0, %arg1 : i32
    %c0_i32 = arith.constant 0 : i32
    %c0_i32_0 = arith.constant 0 : i32
    %c0_i32_1 = arith.constant 0 : i32
    return %1, %c0_i32, %c0_i32_0 : i32, i32, i32
  }
}

</mosaic_0001>

<bundles_post_ra>
// kernel: tpu_custom_call.1
= control target key start
LH: loop header
LB: loop body
LE: loop exit
PB: predicated region body
PF: predicated region fallthrough
CT: control target
= control target key end

     0   :  { %8 = vsyncpa [#allocation4], 0  ;;  %s730_s0 = inlined_call_operand.hbm [shape: f32[2,4,256], index: 0, kind: input, shape index: {}]   ;;  %s731_s1 = inlined_call_operand.vmem [shape: s16[2,1,256], index: 1, kind: input, shape index: {}]   ;;  %s732_s2 = inlined_call_operand.vmem [shape: f32[4,1], index: 2, kind: input, shape index: {}]   ;;  %s733_s3 = inlined_call_operand.hbm [shape: f32[1,1,1], index: 3, kind: output, shape index: {}]  }
   0x1   :  { %9 = vsyncpa [#allocation5], 0  ;;  %s541_s12 = smov [#allocation3]   ;;  %s493_s16 = scalar_lea.hbm %s730_s0, 256 }
   0x2   :  { %s19_s13 = sshll.u32 %s541_s12, 4  ;;  %p494_p0 = scmp.ne.s32.totalorder %s730_s0, %s493_s16  ;;  %s20_s13 = int_to_ptr.vmem [resolvable:$true] %s19_s13 }
   0x3   :  { %p497_p1 = scmp.lt.u32.totalorder %s493_s16, %s730_s0 }
   0x5   :  { %p499_p2 = pnand %p497_p1, %p494_p0 }
   0x7   :  { %502 = shalt.err (!%p499_p2)
}
   0x8   :  { %s503_s21 = scalar_lea.vmem %s20_s13, 256  ;;  %p508_p4 = scmp.lt.s32.totalorder %s20_s13, %s20_s13 }
   0x9   :  { %p504_p3 = scmp.ne.s32.totalorder %s20_s13, %s503_s21  ;;  %p509_p5 = scmp.lt.s32.totalorder %s503_s21, %s503_s21 }
   0xb   :  { %p510_p6 = por %p509_p5, %p508_p4 }
   0xd   :  { %p511_p7 = pnand %p510_p6, %p504_p3 }
   0xf   :  { %514 = shalt.err (!%p511_p7)
}
  0x10   :  { %s542_s22 = smov 128   ;;  %s543_s23 = smov 8  }
  0x11   :  { %25 = dma.hbm_to_vmem [thread:$0]  %s730_s0, 256, %s20_s13, [#allocation4], %s542_s22, %s542_s22, %s543_s23  }
  0x12   :  { %537 = dma.done.wait [#allocation4], 256  }
  0x13   :  { %538 = vsyncadd [#allocation4], 4294967040  ;;  %v59_v0 = vlaneseq  ;;  %v544_v1 = vmov 0   ;;  %v545_v3 = vmov 0.0   ;;  %v283_v4 = vld [vmem:[%s732_s2] sm:$0xf] }
  0x14   :  { %470 = vset.pattern.permute.xlu0 %v544_v1  ;;  %v64_v5 = vld [vmem:[#allocation3] sm:$0xff]  ;;  %v65_v6 = vld [vmem:[#allocation3 + $0x8] sm:$0xff]  ;;  %vm76_vm1 = vcmask 1043456   ;;  %v66_v44 = vld [vmem:[%s731_s1] sm:$0x3]  ;;  %vm388_vm8 = vcmask 1040384  }
  0x15   :  { %vm581_vm0 = vcmp.lt.s32.totalorder %v59_v0, 256  ;;  %286 = vperm.xlu0 %470, %v283_v4   ;;  %v72_v7 = vcombine.high %v64_v5, %v64_v5  ;;  %v73_v8 = vcombine.high %v65_v6, %v65_v6  ;;  %v77_v9 = vsel %vm76_vm1, %v64_v5, -inf  ;;  %v67_v47 = vld [vmem:[%s731_s1 + $0x2] sm:$0x3]  ;;  %s548_s1 = smov [#allocation6]  }
  0x16   :  { %63 = vst.msk [vmem:[#allocation2] sm:$0x3] %vm581_vm0, %v545_v3  ;;  %v91_v11 = vsel %vm76_vm1, %v65_v6, -inf  ;;  %v78_v13 = vrot.slane %v77_v9, 4  ;;  %v594_v43 = vshrl.u32 %v59_v0, 7  ;;  %v602_v46 = vunpack.c.l.b16 %v66_v44  ;;  %s450_s30 = sshll.u32 %s548_s1, 4  ;;  %s451_s30 = int_to_ptr.vmem [resolvable:$true] %s450_s30 }
  0x17   :  { %v84_v10 = vsel %vm76_vm1, %v72_v7, -inf  ;;  %v98_v12 = vsel %vm76_vm1, %v73_v8, -inf  ;;  %v92_v15 = vrot.slane %v91_v11, 4  ;;  %v610_v51 = vunpack.c.l.b16 %v67_v47  ;;  %s515_s4 = scalar_lea.vmem %s451_s30, 16  ;;  %s519_s5 = scalar_lea.vmem %s451_s30, 32 }
  0x18   :  { %v85_v14 = vrot.slane %v84_v10, 4  ;;  %v99_v16 = vrot.slane %v98_v12, 4  ;;  %v79_v17 = vmax.f32 %v77_v9, %v78_v13  ;;  %v600_v45 = vsub.s32 0, %v594_v43  ;;  %p516_p8 = scmp.ne.s32.totalorder %s451_s30, %s515_s4  ;;  %p520_p9 = scmp.lt.s32.totalorder %s451_s30, %s451_s30 }
  0x19   :  { %v93_v19 = vmax.f32 %v91_v11, %v92_v15  ;;  %v608_v49 = vsub.s32 2, %v594_v43  ;;  %vm281_vm6 = vcmp.ne.s32.totalorder %v602_v46, 4294967196  ;;  %vm282_vm7 = vcmp.ne.s32.totalorder %v610_v51, 4294967196  ;;  %p521_p10 = scmp.lt.s32.totalorder %s519_s5, %s515_s4 }
  0x1a   :  { %v86_v18 = vmax.f32 %v84_v10, %v85_v14  ;;  %v100_v20 = vmax.f32 %v98_v12, %v99_v16  ;;  %v80_v21 = vrot.slane %v79_v17, 2  ;;  %v166_v52 = vrot.slane %v602_v46, %v600_v45 }
  0x1b   :  { %v94_v23 = vrot.slane %v93_v19, 2  ;;  %v170_v55 = vrot.slane %v602_v46, %v608_v49  ;;  %v174_v58 = vrot.slane %v610_v51, %v600_v45  ;;  %v178_v1 = vrot.slane %v610_v51, %v608_v49  ;;  %p522_p11 = por %p521_p10, %p520_p9 }
  0x1c   :  { %v87_v22 = vrot.slane %v86_v18, 2  ;;  %v101_v24 = vrot.slane %v100_v20, 2  ;;  %v81_v25 = vmax.f32 %v79_v17, %v80_v21  ;;  %v621_v59 = vrot.slane %v166_v52, %v600_v45 }
  0x1d   :  { %v95_v27 = vmax.f32 %v93_v19, %v94_v23  ;;  %v626_v63 = vrot.slane %v170_v55, %v600_v45  ;;  %v631_v4 = vrot.slane %v174_v58, %v600_v45  ;;  %v638_v9 = vrot.slane %v178_v1, %v600_v45  ;;  %p523_p12 = pnand %p522_p11, %p516_p8 }
  0x1e   :  { %v88_v26 = vmax.f32 %v86_v18, %v87_v22  ;;  %v102_v28 = vmax.f32 %v100_v20, %v101_v24  ;;  %v82_v29 = vrot.slane %v81_v25, 1  ;;  %vm195_vm2 = vcmp.eq.s32.totalorder %v594_v43, %v621_v59 }
  0x1f   :  { %v96_v31 = vrot.slane %v95_v27, 1  ;;  %vm196_vm3 = vcmp.eq.s32.totalorder %v594_v43, %v626_v63  ;;  %vm197_vm4 = vcmp.eq.s32.totalorder %v594_v43, %v631_v4  ;;  %vm198_vm5 = vcmp.eq.s32.totalorder %v594_v43, %v638_v9 }
  0x20   :  { %v89_v30 = vrot.slane %v88_v26, 1  ;;  %v103_v32 = vrot.slane %v102_v28, 1  ;;  %v83_v33 = vmax.f32 %v81_v25, %v82_v29  ;;  %vm439_vm9 = vcmask 0  }
  0x21   :  { %v97_v35 = vmax.f32 %v95_v27, %v96_v31 }
  0x22   :  { %v90_v34 = vmax.f32 %v88_v26, %v89_v30  ;;  %v104_v36 = vmax.f32 %v102_v28, %v103_v32 }
  0x24   :  { %v109_v37 = vcombine.low %v83_v33, %v90_v34  ;;  %v110_v38 = vcombine.low %v97_v35, %v104_v36 }
  0x26   :  { %v113_v39 = vsub.f32 %v64_v5, %v109_v37  ;;  %v114_v40 = vsub.f32 %v65_v6, %v110_v38 }
  0x28   :  { %v115_v41 = vmul.f32 1.442695, %v113_v39  ;;  %v117_v42 = vmul.f32 1.442695, %v114_v40  ;;  %v201_v6 = vcombine.high %v113_v39, %v113_v39  ;;  %v205_v10 = vsel %vm195_vm2, %v113_v39, 0.0 }
  0x29   :  { %v202_v15 = vcombine.high %v114_v40, %v114_v40  ;;  %v209_v16 = vsel %vm76_vm1, %v205_v10, 0.0  ;;  %v207_v18 = vsel %vm197_vm4, %v114_v40, 0.0 }
  0x2a   :  { %473 = vpow2.f32 %v115_v41  ;;  %v206_v13 = vsel %vm196_vm3, %v201_v6, 0.0  ;;  %v210_v22 = vrot.slane %v209_v16, 4  ;;  %v223_v25 = vsel %vm76_vm1, %v207_v18, 0.0 }
  0x2b   :  { %475 = vpow2.f32 %v117_v42  ;;  %v216_v20 = vsel %vm76_vm1, %v206_v13, 0.0  ;;  %v208_v24 = vsel %vm198_vm5, %v202_v15, 0.0  ;;  %v224_v35 = vrot.slane %v223_v25, 4 }
  0x2c   :  { %v217_v27 = vrot.slane %v216_v20, 4  ;;  %v211_v34 = vadd.f32 %v210_v22, %v209_v16  ;;  %v230_v36 = vsel %vm76_vm1, %v208_v24, 0.0 }
  0x2e   :  { %v218_v47 = vadd.f32 %v217_v27, %v216_v20  ;;  %v212_v52 = vrot.slane %v211_v34, 2 }
  0x34   :  { %v474_v48 = vpop.eup %473 }
  0x35   :  { %v476_v50 = vpop.eup %475  ;;  %v121_v53 = vcombine.high %v474_v48, %v474_v48  ;;  %v125_v56 = vsel %vm76_vm1, %v474_v48, 0.0  ;;  %v237_v28 = vsel %vm195_vm2, %v474_v48, 0.0  ;;  %v231_v48 = vrot.slane %v230_v36, 4 }
  0x36   :  { %v122_v54 = vcombine.high %v476_v50, %v476_v50  ;;  %v139_v57 = vsel %vm76_vm1, %v476_v50, 0.0  ;;  %v126_v61 = vrot.slane %v125_v56, 4  ;;  %v239_v31 = vsel %vm197_vm4, %v476_v50, 0.0 }
  0x37   :  { %v132_v60 = vsel %vm76_vm1, %v121_v53, 0.0  ;;  %v140_v0 = vrot.slane %v139_v57, 4  ;;  %v238_v30 = vsel %vm196_vm3, %v121_v53, 0.0  ;;  %v241_v38 = vsel %vm76_vm1, %v237_v28, 0.0 }
  0x38   :  { %v146_v62 = vsel %vm76_vm1, %v122_v54, 0.0  ;;  %v133_v3 = vrot.slane %v132_v60, 4  ;;  %v127_v7 = vadd.f32 %v126_v61, %v125_v56  ;;  %v240_v32 = vsel %vm198_vm5, %v122_v54, 0.0 }
  0x39   :  { %v147_v5 = vrot.slane %v146_v62, 4  ;;  %v141_v8 = vadd.f32 %v140_v0, %v139_v57  ;;  %v248_v40 = vsel %vm76_vm1, %v238_v30, 0.0  ;;  %v255_v41 = vsel %vm76_vm1, %v239_v31, 0.0 }
  0x3a   :  { %v134_v11 = vadd.f32 %v133_v3, %v132_v60  ;;  %v128_v14 = vrot.slane %v127_v7, 2  ;;  %v262_v42 = vsel %vm76_vm1, %v240_v32, 0.0  ;;  %v225_v53 = vadd.f32 %v224_v35, %v223_v25 }
  0x3b   :  { %v148_v12 = vadd.f32 %v147_v5, %v146_v62  ;;  %v142_v17 = vrot.slane %v141_v8, 2  ;;  %v242_v54 = vrot.slane %v241_v38, 4  ;;  %v249_v56 = vrot.slane %v248_v40, 4 }
  0x3c   :  { %v135_v19 = vrot.slane %v134_v11, 2  ;;  %v129_v23 = vadd.f32 %v128_v14, %v127_v7  ;;  %v256_v57 = vrot.slane %v255_v41, 4  ;;  %v263_v58 = vrot.slane %v262_v42, 4 }
  0x3d   :  { %v149_v21 = vrot.slane %v148_v12, 2  ;;  %v143_v26 = vadd.f32 %v142_v17, %v141_v8  ;;  %v219_v62 = vrot.slane %v218_v47, 2  ;;  %v232_v0 = vadd.f32 %v231_v48, %v230_v36 }
  0x3e   :  { %v136_v29 = vadd.f32 %v135_v19, %v134_v11  ;;  %v130_v37 = vrot.slane %v129_v23, 1  ;;  %v213_v3 = vadd.f32 %v212_v52, %v211_v34  ;;  %v226_v5 = vrot.slane %v225_v53, 2 }
  0x3f   :  { %v150_v33 = vadd.f32 %v149_v21, %v148_v12  ;;  %v144_v39 = vrot.slane %v143_v26, 1  ;;  %v243_v6 = vadd.f32 %v242_v54, %v241_v38  ;;  %v250_v7 = vadd.f32 %v249_v56, %v248_v40 }
  0x40   :  { %v137_v44 = vrot.slane %v136_v29, 1  ;;  %v131_v55 = vadd.f32 %v130_v37, %v129_v23  ;;  %v257_v8 = vadd.f32 %v256_v57, %v255_v41  ;;  %v264_v10 = vadd.f32 %v263_v58, %v262_v42 }
  0x41   :  { %v151_v50 = vrot.slane %v150_v33, 1  ;;  %v145_v60 = vadd.f32 %v144_v39, %v143_v26  ;;  %v546_v11 = vmov 1983009808   ;;  %v220_v13 = vadd.f32 %v219_v62, %v218_v47 }
  0x42   :  { %v138_v61 = vadd.f32 %v137_v44, %v136_v29  ;;  %477 = vlog2.f32 %v131_v55  ;;  %v676_v12 = vunpack.c.l.s4 %v546_v11  ;;  %v233_v14 = vrot.slane %v232_v0, 2 }
  0x43   :  { %v152_v1 = vadd.f32 %v151_v50, %v150_v33  ;;  %479 = vlog2.f32 %v145_v60  ;;  %v214_v15 = vrot.slane %v213_v3, 1  ;;  %v227_v16 = vadd.f32 %v226_v5, %v225_v53 }
  0x44   :  { %481 = vlog2.f32 %v138_v61  ;;  %v244_v17 = vrot.slane %v243_v6, 2  ;;  %v251_v18 = vrot.slane %v250_v7, 2  ;;  %v258_v19 = vrot.slane %v257_v8, 2 }
  0x45   :  { %483 = vlog2.f32 %v152_v1  ;;  %v265_v20 = vrot.slane %v264_v10, 2  ;;  %v336_v21 = vunpack.c.0.s8 %v676_v12  ;;  %v221_v22 = vrot.slane %v220_v13, 1 }
  0x46   :  { %485 = vrcp.f32 %v131_v55  ;;  %v234_v23 = vadd.f32 %v233_v14, %v232_v0  ;;  %v679_v24 = vadd.f32 %v214_v15, %v213_v3  ;;  %v228_v25 = vrot.slane %v227_v16, 1 }
  0x47   :  { %487 = vrcp.f32 %v138_v61  ;;  %v245_v26 = vadd.f32 %v244_v17, %v243_v6  ;;  %v252_v28 = vadd.f32 %v251_v18, %v250_v7  ;;  %v259_v29 = vadd.f32 %v258_v19, %v257_v8 }
  0x48   :  { %489 = vrcp.f32 %v145_v60  ;;  %v266_v30 = vadd.f32 %v265_v20, %v264_v10  ;;  %v222_v44 = vadd.f32 %v221_v22, %v220_v13  ;;  %v229_v47 = vadd.f32 %v228_v25, %v227_v16 }
  0x49   :  { %491 = vrcp.f32 %v152_v1  ;;  %v235_v48 = vrot.slane %v234_v23, 1  ;;  %v246_v9 = vrot.slane %v245_v26, 1  ;;  %v253_v57 = vrot.slane %v252_v28, 1 }
  0x4a   :  { %v260_v58 = vrot.slane %v259_v29, 1  ;;  %v267_v60 = vrot.slane %v266_v30, 1 }
  0x4b   :  { %v236_v10 = vadd.f32 %v235_v48, %v234_v23  ;;  %v247_v18 = vadd.f32 %v246_v9, %v245_v26  ;;  %v254_v19 = vadd.f32 %v253_v57, %v252_v28  ;;  %v547_v57 = vmov 1966171168  }
  0x4c   :  { %v478_v35 = vpop.eup %477  ;;  %v261_v20 = vadd.f32 %v260_v58, %v259_v29  ;;  %v268_v22 = vadd.f32 %v267_v60, %v266_v30  ;;  %v399_v58 = vunpack.c.l.s4 %v547_v57 }
  0x4d   :  { %v480_v39 = vpop.eup %479  ;;  %v154_v56 = vmul.f32 0.6931472, %v478_v35 }
  0x4e   :  { %v482_v4 = vpop.eup %481  ;;  %v158_v7 = vmul.f32 0.6931472, %v480_v39  ;;  %v400_v51 = vunpack.c.0.s8 %v399_v58 }
  0x4f   :  { %v484_v50 = vpop.eup %483  ;;  %v156_v6 = vmul.f32 0.6931472, %v482_v4 }
  0x50   :  { %v486_v61 = vpop.eup %485  ;;  %v160_v8 = vmul.f32 0.6931472, %v484_v50  ;;  %v271_v35 = vsub.f32 %v229_v47, %v158_v7 }
  0x51   :  { %v488_v5 = vpop.eup %487  ;;  %v277_v39 = vmul.f32 %v486_v61, %v247_v18  ;;  %v403_v18 = vsub.s32 %v400_v51, %v594_v43 }
  0x52   :  { %v490_v11 = vpop.eup %489 }
  0x53   :  { %v492_v17 = vpop.eup %491  ;;  %v353_v48 = vsub.f32 1.0, %v277_v39 }
  0x54   :  { %v280_v26 = vmul.f32 %v492_v17, %v268_v22 }
  0x55   :  { %v357_v12 = vmul.f32 %v353_v48, %v353_v48 }
  0x94   :  { %v287_v27 = vpop.permute.xlu0 %286 }
  0x95   :  { %v289_v31 = vsel %vm195_vm2, %v287_v27, 0.0  ;;  %v290_v32 = vsel %vm196_vm3, %v287_v27, 0.0  ;;  %v291_v33 = vsel %vm197_vm4, %v287_v27, 0.0  ;;  %v292_v34 = vsel %vm198_vm5, %v287_v27, 0.0 }
  0x96   :  { %v293_v36 = vsel %vm76_vm1, %v289_v31, 0.0  ;;  %v300_v37 = vsel %vm76_vm1, %v290_v32, 0.0  ;;  %v307_v59 = vsel %vm76_vm1, %v291_v33, 0.0  ;;  %v314_v38 = vsel %vm76_vm1, %v292_v34, 0.0 }
  0x97   :  { %v294_v63 = vrot.slane %v293_v36, 4  ;;  %v301_v40 = vrot.slane %v300_v37, 4  ;;  %v308_v41 = vrot.slane %v307_v59, 4  ;;  %v315_v42 = vrot.slane %v314_v38, 4 }
  0x98   :  { %v269_v33 = vsub.f32 %v679_v24, %v154_v56  ;;  %v270_v34 = vsub.f32 %v222_v44, %v156_v6 }
  0x99   :  { %v295_v52 = vadd.f32 %v294_v63, %v293_v36  ;;  %v302_v53 = vadd.f32 %v301_v40, %v300_v37  ;;  %v309_v54 = vadd.f32 %v308_v41, %v307_v59  ;;  %v316_v55 = vadd.f32 %v315_v42, %v314_v38 }
  0x9a   :  { %v272_v36 = vsub.f32 %v236_v10, %v160_v8  ;;  %v278_v63 = vmul.f32 %v488_v5, %v254_v19  ;;  %v279_v40 = vmul.f32 %v490_v11, %v261_v20  ;;  %v339_v42 = vsub.s32 %v336_v21, %v594_v43  ;;  %v387_v20 = vld [vmem:[#allocation2] sm:$0x3] }
  0x9b   :  { %v296_v62 = vrot.slane %v295_v52, 2  ;;  %v303_v0 = vrot.slane %v302_v53, 2  ;;  %v310_v1 = vrot.slane %v309_v54, 2  ;;  %v317_v3 = vrot.slane %v316_v55, 2 }
  0x9c   :  { %v354_v9 = vsub.f32 1.0, %v278_v63  ;;  %v355_v50 = vsub.f32 1.0, %v279_v40 }
  0x9d   :  { %v297_v13 = vadd.f32 %v296_v62, %v295_v52  ;;  %v304_v14 = vadd.f32 %v303_v0, %v302_v53  ;;  %v311_v15 = vadd.f32 %v310_v1, %v309_v54  ;;  %v318_v16 = vadd.f32 %v317_v3, %v316_v55 }
  0x9e   :  { %v356_v52 = vsub.f32 1.0, %v280_v26  ;;  %v358_v21 = vmul.f32 %v354_v9, %v354_v9  ;;  %v359_v60 = vmul.f32 %v355_v50, %v355_v50 }
  0x9f   :  { %v298_v25 = vrot.slane %v297_v13, 1  ;;  %v305_v27 = vrot.slane %v304_v14, 1  ;;  %v312_v31 = vrot.slane %v311_v15, 1  ;;  %v319_v32 = vrot.slane %v318_v16, 1 }
  0xa0   :  { %v360_v61 = vmul.f32 %v356_v52, %v356_v52 }
  0xa1   :  { %v299_v23 = vadd.f32 %v298_v25, %v297_v13  ;;  %v306_v37 = vadd.f32 %v305_v27, %v304_v14  ;;  %v313_v59 = vadd.f32 %v312_v31, %v311_v15  ;;  %v320_v38 = vadd.f32 %v319_v32, %v318_v16 }
  0xa2   :  { %v430_v27 = vsub.s32 1, %v594_v43 }
  0xa3   :  { %v321_v28 = vsub.f32 0.0, %v299_v23  ;;  %v322_v29 = vsub.f32 0.0, %v306_v37  ;;  %v323_v30 = vsub.f32 0.0, %v313_v59  ;;  %v324_v41 = vsub.f32 0.0, %v320_v38 }
  0xa5   :  { %v325_v24 = vmul.f32 %v321_v28, %v269_v33  ;;  %v326_v4 = vmul.f32 %v322_v29, %v270_v34  ;;  %v327_v44 = vmul.f32 %v323_v30, %v271_v35  ;;  %v328_v47 = vmul.f32 %v324_v41, %v272_v36 }
  0xa7   :  { %v333_v53 = vcombine.low %v325_v24, %v326_v4  ;;  %v341_v54 = vcombine.low %v327_v44, %v328_v47 }
  0xa9   :  { %v340_v55 = vrot.slane %v333_v53, %v339_v42  ;;  %v348_v56 = vrot.slane %v341_v54, %v339_v42 }
  0xab   :  { %v351_v62 = vsel %vm281_vm6, %v340_v55, 0.0  ;;  %v352_v0 = vsel %vm282_vm7, %v348_v56, 0.0 }
  0xac   :  { %v366_v1 = vrot.slane %v351_v62, %v600_v45  ;;  %v370_v3 = vrot.slane %v351_v62, %v608_v49  ;;  %v374_v5 = vrot.slane %v352_v0, %v600_v45  ;;  %v378_v46 = vrot.slane %v352_v0, %v608_v49 }
  0xae   :  { %v383_v6 = vmul.f32 %v366_v1, %v357_v12  ;;  %v384_v7 = vmul.f32 %v370_v3, %v358_v21  ;;  %v385_v8 = vmul.f32 %v374_v5, %v359_v60  ;;  %v386_v10 = vmul.f32 %v378_v46, %v360_v61 }
  0xb0   :  { %v389_v11 = vsel %vm388_vm8, %v383_v6, 0.0  ;;  %v390_v13 = vsel %vm388_vm8, %v385_v8, 0.0  ;;  %v392_v14 = vsel %vm388_vm8, %v384_v7, 0.0  ;;  %v393_v15 = vsel %vm388_vm8, %v386_v10, 0.0 }
  0xb1   :  { %v391_v16 = vadd.f32 %v390_v13, %v389_v11  ;;  %v394_v17 = vadd.f32 %v393_v15, %v392_v14 }
  0xb3   :  { %v397_v19 = vcombine.low %v391_v16, %v394_v17 }
  0xb5   :  { %v404_v49 = vrot.slane %v397_v19, %v403_v18 }
  0xb7   :  { %v411_v22 = vrot.slane %v404_v49, %v403_v18 }
  0xb9   :  { %v413_v25 = vadd.f32 %v411_v22, %v387_v20 }
  0xbb   :  { %418 = vst.msk [vmem:[#allocation2] sm:$0x3] %vm581_vm0, %v413_v25 }
  0xc2   :  { %v422_v31 = vld [vmem:[#allocation2] sm:$0x3] }
  0xc3   :  { %v427_v32 = vrot.slane %v422_v31, %v600_v45  ;;  %v431_v33 = vrot.slane %v422_v31, %v430_v27 }
  0xc5   :  { %v434_v34 = vsel %vm388_vm8, %v427_v32, 0.0  ;;  %v435_v35 = vsel %vm388_vm8, %v431_v33, 0.0 }
  0xc6   :  { %v436_v36 = vadd.f32 %v435_v35, %v434_v34 }
  0xc8   :  { %437 = vadd.xlane.f32.xlu0 %v436_v36 }
 0x155   :  { %v438_v23 = vpop.xlane.xlu0 %437 }
 0x156   :  { %440 = vst.msk [vmem:[#allocation6] sm:$0x1] %vm439_vm9, %v438_v23 }
 0x157   :  { %526 = shalt.err (!%p523_p12)
}
 0x158   :  { %s527_s8 = scalar_lea.hbm %s733_s3, 16 }
 0x159   :  { %p528_p13 = scmp.ne.s32.totalorder %s733_s3, %s527_s8  ;;  %p531_p0 = scmp.lt.u32.totalorder %s527_s8, %s733_s3 }
 0x15b   :  { %p533_p1 = pnand %p531_p0, %p528_p13 }
 0x15d   :  { %536 = shalt.err (!%p533_p1)
}
 0x15e   :  { %453 = dma.vmem_to_hbm [thread:$0]  %s451_s30, 16, %s733_s3, [#allocation5]  }
 0x15f   :  { %539 = dma.done.wait [#allocation5], 16  }
 0x160   :  { %540 = vsyncadd [#allocation5], 4294967280 }
 0x161   :  { %457 = vsyncpa [#allocation4], 1 }
 0x162   :  { %458 = vsyncpa [#allocation5], 1 }

</bundles_post_ra>
